<compile_context>
chip_gen: v5e
topology: v5e:2x2
jax: 0.10.0
libtpu: 0.0.40
codegen_flags: <defaults>
</compile_context>

<pallas_src>
import jax
import jax.numpy as jnp
from jax.experimental import pallas as pl
from jax.experimental.pallas import tpu as pltpu

HIDDEN = 128
HEAD_ROWS = 8        # fused head output rows (sublane-aligned): [l0, l1, value, 0...0]


def _round_up(n, m):
    return (n + m - 1) // m * m


def ac_policy_kernel(x_ref, w1_ref, b1_ref, wh_ref, bh_ref, out_ref):
    x = x_ref[...]                          # (4, TB)   batch in lanes
    w1 = w1_ref[...]                        # (128, 4)

    # Layer 1 as 4 VPU FMAs: h[i, b] = sum_k w1[i, k] * x[k, b] + b1[i]
    h = w1[:, 0:1] * x[0:1, :] + b1_ref[...]          # (128,1)*(1,TB)+(128,1) -> (128,TB)
    for k in range(1, 4):
        h = h + w1[:, k:k + 1] * x[k:k + 1, :]
    h = jnp.maximum(h, 0.0)                            # ReLU

    # Fused heads: rows 0,1 = action logits, row 2 = state value, rows 3..7 = 0.
    heads = jnp.dot(wh_ref[...], h, preferred_element_type=jnp.float32) + bh_ref[...]

    # 2-class softmax via sigmoid closed form (no cross-lane reductions):
    #   p1 = sigmoid(l1 - l0) = 1 / (1 + exp(l0 - l1)),  p0 = 1 - p1.
    d = heads[0:1, :] - heads[1:2, :]                  # (1, TB)
    p1 = 1.0 / (1.0 + jnp.exp(d))                      # single narrow EUP exp
    p0 = 1.0 - p1

    sub = jax.lax.broadcasted_iota(jnp.int32, heads.shape, 0)    # (8, TB) sublane index
    out_ref[...] = jnp.where(sub == 0, p0, jnp.where(sub == 1, p1, heads))


def ac_policy_forward(x, packed_params, *, tile_b=2048):
    """x: (B, 4) float32. Returns (action_prob (B, 2), state_values (B, 1))."""
    w1t, b1t, wht, bht = packed_params
    B = x.shape[0]

    xt = x.T                                           # (4, B) batch-in-lanes
    b_pad = _round_up(max(B, 1), 128)

    # Prefer >= 2 grid steps (v7x has 2 TensorCores); cap the tile at tile_b.
    if b_pad > 128:
        tb = min(tile_b, _round_up(pl.cdiv(b_pad, 2), 128))
    else:
        tb = b_pad
    b_pad = _round_up(b_pad, tb)

    if b_pad != B:
        xt = jnp.pad(xt, ((0, 0), (0, b_pad - B)))

    grid = (b_pad // tb,)

    flops = 2 * b_pad * (4 * HIDDEN + HIDDEN * HEAD_ROWS)
    bytes_accessed = 4 * (4 * b_pad + HIDDEN * 4 + HIDDEN
                          + HEAD_ROWS * HIDDEN + HEAD_ROWS + HEAD_ROWS * b_pad)

    out = pl.pallas_call(
        ac_policy_kernel,
        out_shape=jax.ShapeDtypeStruct((HEAD_ROWS, b_pad), jnp.float32),
        grid=grid,
        in_specs=[
            pl.BlockSpec((4, tb), lambda i: (0, i)),              # xT: tiled over batch lanes
            pl.BlockSpec((HIDDEN, 4), lambda i: (0, 0)),          # w1T: resident
            pl.BlockSpec((HIDDEN, 1), lambda i: (0, 0)),          # b1T: resident
            pl.BlockSpec((HEAD_ROWS, HIDDEN), lambda i: (0, 0)),  # fused head WT: resident
            pl.BlockSpec((HEAD_ROWS, 1), lambda i: (0, 0)),       # fused head bT: resident
        ],
        out_specs=pl.BlockSpec((HEAD_ROWS, tb), lambda i: (0, i)),
        compiler_params=pltpu.CompilerParams(
            dimension_semantics=("parallel",)),                   # shard batch over TCs (v7x)
        cost_estimate=pl.CostEstimate(
            flops=flops,
            transcendentals=b_pad,                                # one exp per batch element
            bytes_accessed=bytes_accessed),
    )(xt, w1t, b1t, wht, bht)

    return out[0:2, :B].T, out[2:3, :B].T


def init_params(key):
    """Deterministic init mimicking nn.Linear's U(-1/sqrt(fan_in), 1/sqrt(fan_in)).

    Stored as (in_features, out_features) so the pure-JAX reference is x @ W + b.
    """
    k = jax.random.split(key, 6)

    def lin(kw, kb, fan_in, fan_out):
        bound = 1.0 / jnp.sqrt(jnp.float32(fan_in))
        w = jax.random.uniform(kw, (fan_in, fan_out), jnp.float32, -bound, bound)
        b = jax.random.uniform(kb, (1, fan_out), jnp.float32, -bound, bound)
        return w, b

    w1, b1 = lin(k[0], k[1], 4, HIDDEN)       # affine1
    wa, ba = lin(k[2], k[3], HIDDEN, 2)       # action_head
    wv, bv = lin(k[4], k[5], HIDDEN, 1)       # value_head
    return (w1, b1, wa, ba, wv, bv)


def pack_params(raw_params):
    """Pack into the kernel's batch-in-lanes layout (transposed, heads fused)."""
    w1, b1, wa, ba, wv, bv = raw_params
    w1t = w1.T                                              # (128, 4)
    b1t = b1.reshape(HIDDEN, 1)                             # (128, 1)
    wht = jnp.zeros((HEAD_ROWS, HIDDEN), jnp.float32)
    wht = wht.at[0:2, :].set(wa.T).at[2:3, :].set(wv.T)     # rows: [act0, act1, value, 0..0]
    bht = jnp.zeros((HEAD_ROWS, 1), jnp.float32)
    bht = bht.at[0:2, 0].set(ba.reshape(2)).at[2, 0].set(bv.reshape(()))
    return (w1t, b1t, wht, bht)


def reference_forward(x, raw_params):
    w1, b1, wa, ba, wv, bv = raw_params
    h = jnp.maximum(x @ w1 + b1, 0.0)
    logits = h @ wa + ba
    ap = jax.nn.softmax(logits, axis=-1)
    sv = h @ wv + bv
    return ap, sv


# TODO(synk): saved_actions / rewards bookkeeping and Categorical sampling are RL
# training-loop state, not part of forward(); not implemented in the kernel.

if __name__ == "__main__":
    key = jax.random.PRNGKey(0)
    kx, kp = jax.random.split(key)

    raw = init_params(kp)
    packed = pack_params(raw)

    def check(x):
        ap, sv = ac_policy_forward(x, packed)
        jax.block_until_ready((ap, sv))
        ap_ref, sv_ref = reference_forward(x, raw)
        assert ap.shape == (x.shape[0], 2) and sv.shape == (x.shape[0], 1)
        assert jnp.allclose(ap, ap_ref, atol=1e-5, rtol=1e-5)
        assert jnp.allclose(sv, sv_ref, atol=1e-5, rtol=1e-5)
        assert jnp.allclose(jnp.sum(ap, axis=-1), 1.0, atol=1e-5)

    # Case 1: small, single-tile path.
    check(jax.random.normal(kx, (8, 4), jnp.float32))

    # Case 2: batch not a multiple of 128 (exercises lane padding).
    check(jax.random.normal(jax.random.fold_in(kx, 1), (5, 4), jnp.float32))

    # Case 3: batch large enough to exercise the multi-step (2-tile) grid.
    check(jax.random.normal(jax.random.fold_in(kx, 2), (300, 4), jnp.float32))

    print("KERNEL_OK")
</pallas_src>

<mosaic_0001>
module attributes {stable_mosaic.version = 11 : i64} {
  func.func @ac_policy_kernel(%arg0: i32, %arg1: memref<4x128xf32, #tpu.memory_space<vmem>>, %arg2: memref<128x4xf32, #tpu.memory_space<vmem>>, %arg3: memref<128x1xf32, #tpu.memory_space<vmem>>, %arg4: memref<8x128xf32, #tpu.memory_space<vmem>>, %arg5: memref<8x1xf32, #tpu.memory_space<vmem>>, %arg6: memref<8x128xf32, #tpu.memory_space<vmem>>) attributes {dimension_semantics = [#tpu.dimension_semantics<parallel>], iteration_bounds = array<i64: 1>, scalar_prefetch = 0 : i64, scratch_operands = 0 : i64, tpu.core_type = #tpu.core_type<tc>, window_params = [{transform_indices = @transform_0, window_bounds = array<i64: 4, 128>}, {pipeline_mode = #tpu.pipeline_mode<synchronous>, transform_indices = @transform_1, window_bounds = array<i64: 128, 4>}, {pipeline_mode = #tpu.pipeline_mode<synchronous>, transform_indices = @transform_2, window_bounds = array<i64: 128, 1>}, {pipeline_mode = #tpu.pipeline_mode<synchronous>, transform_indices = @transform_3, window_bounds = array<i64: 8, 128>}, {pipeline_mode = #tpu.pipeline_mode<synchronous>, transform_indices = @transform_4, window_bounds = array<i64: 8, 1>}, {transform_indices = @transform_5, window_bounds = array<i64: 8, 128>}]} {
    %c0 = arith.constant 0 : index
    %c0_0 = arith.constant 0 : index
    %0 = vector.load %arg1[%c0, %c0_0] : memref<4x128xf32, #tpu.memory_space<vmem>>, vector<4x128xf32>
    %c0_1 = arith.constant 0 : index
    %c0_2 = arith.constant 0 : index
    %1 = vector.load %arg2[%c0_1, %c0_2] : memref<128x4xf32, #tpu.memory_space<vmem>>, vector<128x4xf32>
    %2 = vector.extract_strided_slice %1 {offsets = [0, 0], sizes = [128, 1], strides = [1, 1]} : vector<128x4xf32> to vector<128x1xf32>
    %3 = vector.extract_strided_slice %0 {offsets = [0, 0], sizes = [1, 128], strides = [1, 1]} : vector<4x128xf32> to vector<1x128xf32>
    %4 = vector.broadcast %2 : vector<128x1xf32> to vector<128x128xf32>
    %5 = vector.broadcast %3 : vector<1x128xf32> to vector<128x128xf32>
    %6 = arith.mulf %4, %5 : vector<128x128xf32>
    %c0_3 = arith.constant 0 : index
    %c0_4 = arith.constant 0 : index
    %7 = vector.load %arg3[%c0_3, %c0_4] : memref<128x1xf32, #tpu.memory_space<vmem>>, vector<128x1xf32>
    %8 = vector.broadcast %7 : vector<128x1xf32> to vector<128x128xf32>
    %9 = arith.addf %6, %8 : vector<128x128xf32>
    %10 = vector.extract_strided_slice %1 {offsets = [0, 1], sizes = [128, 1], strides = [1, 1]} : vector<128x4xf32> to vector<128x1xf32>
    %11 = vector.extract_strided_slice %0 {offsets = [1, 0], sizes = [1, 128], strides = [1, 1]} : vector<4x128xf32> to vector<1x128xf32>
    %12 = vector.broadcast %10 : vector<128x1xf32> to vector<128x128xf32>
    %13 = vector.broadcast %11 : vector<1x128xf32> to vector<128x128xf32>
    %14 = arith.mulf %12, %13 : vector<128x128xf32>
    %15 = arith.addf %9, %14 : vector<128x128xf32>
    %16 = vector.extract_strided_slice %1 {offsets = [0, 2], sizes = [128, 1], strides = [1, 1]} : vector<128x4xf32> to vector<128x1xf32>
    %17 = vector.extract_strided_slice %0 {offsets = [2, 0], sizes = [1, 128], strides = [1, 1]} : vector<4x128xf32> to vector<1x128xf32>
    %18 = vector.broadcast %16 : vector<128x1xf32> to vector<128x128xf32>
    %19 = vector.broadcast %17 : vector<1x128xf32> to vector<128x128xf32>
    %20 = arith.mulf %18, %19 : vector<128x128xf32>
    %21 = arith.addf %15, %20 : vector<128x128xf32>
    %22 = vector.extract_strided_slice %1 {offsets = [0, 3], sizes = [128, 1], strides = [1, 1]} : vector<128x4xf32> to vector<128x1xf32>
    %23 = vector.extract_strided_slice %0 {offsets = [3, 0], sizes = [1, 128], strides = [1, 1]} : vector<4x128xf32> to vector<1x128xf32>
    %24 = vector.broadcast %22 : vector<128x1xf32> to vector<128x128xf32>
    %25 = vector.broadcast %23 : vector<1x128xf32> to vector<128x128xf32>
    %26 = arith.mulf %24, %25 : vector<128x128xf32>
    %27 = arith.addf %21, %26 : vector<128x128xf32>
    %cst = arith.constant 0.000000e+00 : f32
    %28 = vector.broadcast %cst : f32 to vector<128x128xf32>
    %29 = arith.maximumf %27, %28 : vector<128x128xf32>
    %c0_5 = arith.constant 0 : index
    %c0_6 = arith.constant 0 : index
    %30 = vector.load %arg4[%c0_5, %c0_6] : memref<8x128xf32, #tpu.memory_space<vmem>>, vector<8x128xf32>
    %cst_7 = arith.constant dense<0.000000e+00> : vector<8x128xf32>
    %31 = tpu.matmul %30, %29, %cst_7 {dimension_numbers = #tpu.dot_dimension_numbers<[1], [0], [0], [1], [0, 0, 1, 1], [], []>} : vector<8x128xf32>, vector<128x128xf32>, vector<8x128xf32> -> vector<8x128xf32>
    %c0_8 = arith.constant 0 : index
    %c0_9 = arith.constant 0 : index
    %32 = vector.load %arg5[%c0_8, %c0_9] : memref<8x1xf32, #tpu.memory_space<vmem>>, vector<8x1xf32>
    %33 = vector.broadcast %32 : vector<8x1xf32> to vector<8x128xf32>
    %34 = arith.addf %31, %33 : vector<8x128xf32>
    %35 = vector.extract_strided_slice %34 {offsets = [0, 0], sizes = [1, 128], strides = [1, 1]} : vector<8x128xf32> to vector<1x128xf32>
    %36 = vector.extract_strided_slice %34 {offsets = [1, 0], sizes = [1, 128], strides = [1, 1]} : vector<8x128xf32> to vector<1x128xf32>
    %37 = arith.subf %35, %36 : vector<1x128xf32>
    %38 = math.exp %37 : vector<1x128xf32>
    %cst_10 = arith.constant 1.000000e+00 : f32
    %39 = vector.broadcast %cst_10 : f32 to vector<1x128xf32>
    %40 = arith.addf %39, %38 : vector<1x128xf32>
    %cst_11 = arith.constant 1.000000e+00 : f32
    %41 = vector.broadcast %cst_11 : f32 to vector<1x128xf32>
    %42 = arith.divf %41, %40 : vector<1x128xf32>
    %cst_12 = arith.constant 1.000000e+00 : f32
    %43 = vector.broadcast %cst_12 : f32 to vector<1x128xf32>
    %44 = arith.subf %43, %42 : vector<1x128xf32>
    %45 = tpu.iota {dimensions = array<i32: 0>} : vector<8x128xi32>
    %c0_i32 = arith.constant 0 : i32
    %46 = vector.broadcast %c0_i32 : i32 to vector<8x128xi32>
    %47 = arith.cmpi eq, %45, %46 : vector<8x128xi32>
    %c1_i32 = arith.constant 1 : i32
    %48 = vector.broadcast %c1_i32 : i32 to vector<8x128xi32>
    %49 = arith.cmpi eq, %45, %48 : vector<8x128xi32>
    %50 = vector.shape_cast %42 : vector<1x128xf32> to vector<1x128xf32>
    %51 = vector.broadcast %50 : vector<1x128xf32> to vector<8x128xf32>
    %52 = arith.select %49, %51, %34 : vector<8x128xi1>, vector<8x128xf32>
    %53 = vector.shape_cast %44 : vector<1x128xf32> to vector<1x128xf32>
    %54 = vector.broadcast %53 : vector<1x128xf32> to vector<8x128xf32>
    %55 = arith.select %47, %54, %52 : vector<8x128xi1>, vector<8x128xf32>
    %c0_13 = arith.constant 0 : index
    %c0_14 = arith.constant 0 : index
    %56 = vector.load %arg6[%c0_13, %c0_14] : memref<8x128xf32, #tpu.memory_space<vmem>>, vector<8x128xf32>
    tpu.vector_store %arg6[%c0_13, %c0_14], %55 {strides = array<i32>} : memref<8x128xf32, #tpu.memory_space<vmem>>, vector<8x128xf32>,
    return
  }
  func.func @transform_0(%arg0: i32) -> (i32, i32) {
    %c0_i32 = arith.constant 0 : i32
    %c0_i32_0 = arith.constant 0 : i32
    return %c0_i32, %arg0 : i32, i32
  }
  func.func @transform_1(%arg0: i32) -> (i32, i32) {
    %c0_i32 = arith.constant 0 : i32
    %c0_i32_0 = arith.constant 0 : i32
    %c0_i32_1 = arith.constant 0 : i32
    return %c0_i32, %c0_i32_0 : i32, i32
  }
  func.func @transform_2(%arg0: i32) -> (i32, i32) {
    %c0_i32 = arith.constant 0 : i32
    %c0_i32_0 = arith.constant 0 : i32
    %c0_i32_1 = arith.constant 0 : i32
    return %c0_i32, %c0_i32_0 : i32, i32
  }
  func.func @transform_3(%arg0: i32) -> (i32, i32) {
    %c0_i32 = arith.constant 0 : i32
    %c0_i32_0 = arith.constant 0 : i32
    %c0_i32_1 = arith.constant 0 : i32
    return %c0_i32, %c0_i32_0 : i32, i32
  }
  func.func @transform_4(%arg0: i32) -> (i32, i32) {
    %c0_i32 = arith.constant 0 : i32
    %c0_i32_0 = arith.constant 0 : i32
    %c0_i32_1 = arith.constant 0 : i32
    return %c0_i32, %c0_i32_0 : i32, i32
  }
  func.func @transform_5(%arg0: i32) -> (i32, i32) {
    %c0_i32 = arith.constant 0 : i32
    %c0_i32_0 = arith.constant 0 : i32
    return %c0_i32, %arg0 : i32, i32
  }
}

</mosaic_0001>

<bundles_post_ra>
// kernel: tpu_custom_call.1
= control target key start
LH: loop header
LB: loop body
LE: loop exit
PB: predicated region body
PF: predicated region fallthrough
CT: control target
= control target key end

     0   :  { %v689_v3 = vmov 0   ;;  %s1103_s0 = inlined_call_operand.vmem [shape: f32[4,128], index: 0, kind: input, shape index: {}]   ;;  %s1104_s1 = inlined_call_operand.vmem [shape: f32[128,4], index: 1, kind: input, shape index: {}]   ;;  %s1105_s2 = inlined_call_operand.vmem [shape: f32[128,1], index: 2, kind: input, shape index: {}]   ;;  %s1106_s3 = inlined_call_operand.vmem [shape: f32[8,128], index: 3, kind: input, shape index: {}]   ;;  %s1107_s4 = inlined_call_operand.vmem [shape: f32[8,1], index: 4, kind: input, shape index: {}]   ;;  %s1108_s5 = inlined_call_operand.hbm [shape: f32[8,128], index: 5, kind: output, shape index: {}]  }
   0x1   :  { %v727_v0 = vld [vmem:[%s1104_s1 + $0x20] sm:$0xff]  ;;  %v732_v1 = vld [vmem:[%s1104_s1 + $0x10] sm:$0xff]  ;;  %636 = vset.pattern.permute.xlu2 %v689_v3  ;;  %635 = vset.pattern.permute.xlu1 %v689_v3 }
   0x2   :  { %v737_v2 = vld [vmem:[%s1104_s1] sm:$0xff]  ;;  %634 = vset.pattern.permute.xlu0 %v689_v3  ;;  %60 = vperm.xlu2 %636, %v727_v0  }
   0x3   :  { %50 = vperm.xlu1 %635, %v732_v1   ;;  %40 = vperm.xlu0 %634, %v737_v2  }
   0x4   :  { %10 = vsyncpa [#allocation3], 0  ;;  %v748_v4 = vld [vmem:[%s1104_s1 + $0x28] sm:$0xff]  ;;  %v753_v5 = vld [vmem:[%s1104_s1 + $0x18] sm:$0xff]  ;;  %v690_v33 = vmov 1   ;;  %v691_v37 = vmov 2  }
   0x5   :  { %v758_v6 = vld [vmem:[%s1104_s1 + $0x8] sm:$0xff]  ;;  %v766_v7 = vld [vmem:[%s1104_s1 + $0x40] sm:$0xff]  ;;  %v771_v8 = vld [vmem:[%s1104_s1 + $0x38] sm:$0xff]  ;;  %v692_v43 = vmov 3   ;;  %s620_s11 = sshll.u32 %s1108_s5, 4  ;;  %s621_s11 = int_to_ptr.hbm [resolvable:$true] %s620_s11 }
   0x6   :  { %v776_v9 = vld [vmem:[%s1104_s1 + $0x30] sm:$0xff]  ;;  %v784_v10 = vld [vmem:[%s1104_s1 + $0x58] sm:$0xff]  ;;  %v794_v12 = vld [vmem:[%s1104_s1 + $0x48] sm:$0xff] }
   0x7   :  { %v789_v11 = vld [vmem:[%s1104_s1 + $0x50] sm:$0xff]  ;;  %v807_v14 = vld [vmem:[%s1104_s1 + $0x68] sm:$0xff]  ;;  %v812_v15 = vld [vmem:[%s1104_s1 + $0x60] sm:$0xff] }
   0x8   :  { %v802_v13 = vld [vmem:[%s1104_s1 + $0x70] sm:$0xff]  ;;  %v136_v16 = vld [vmem:[%s1105_s2 + $0x8] sm:$0xff]  ;;  %v135_v17 = vld [vmem:[%s1105_s2] sm:$0xff] }
   0x9   :  { %v826_v18 = vld [vmem:[%s1104_s1 + $0x78] sm:$0xff]  ;;  %v139_v19 = vld [vmem:[%s1105_s2 + $0x20] sm:$0xff]  ;;  %v137_v21 = vld [vmem:[%s1105_s2 + $0x10] sm:$0xff] }
   0xa   :  { %65 = vperm.xlu2 %636, %v748_v4   ;;  %v138_v20 = vld [vmem:[%s1105_s2 + $0x18] sm:$0xff]  ;;  %v141_v23 = vld [vmem:[%s1105_s2 + $0x30] sm:$0xff]  ;;  %v140_v24 = vld [vmem:[%s1105_s2 + $0x28] sm:$0xff] }
   0xb   :  { %55 = vperm.xlu1 %635, %v753_v5   ;;  %45 = vperm.xlu0 %634, %v758_v6   ;;  %v142_v22 = vld [vmem:[%s1105_s2 + $0x38] sm:$0xff]  ;;  %v145_v25 = vld [vmem:[%s1105_s2 + $0x50] sm:$0xff]  ;;  %v144_v26 = vld [vmem:[%s1105_s2 + $0x48] sm:$0xff] }
   0xc   :  { %v143_v27 = vld [vmem:[%s1105_s2 + $0x40] sm:$0xff]  ;;  %v148_v28 = vld [vmem:[%s1105_s2 + $0x68] sm:$0xff]  ;;  %v146_v30 = vld [vmem:[%s1105_s2 + $0x58] sm:$0xff] }
   0xd   :  { %v147_v29 = vld [vmem:[%s1105_s2 + $0x60] sm:$0xff]  ;;  %v150_v31 = vld [vmem:[%s1105_s2 + $0x78] sm:$0xff]  ;;  %v149_v32 = vld [vmem:[%s1105_s2 + $0x70] sm:$0xff] }
   0xe   :  { %v897_v41 = vld [vmem:[%s1103_s0] sm:$0xf] }
   0xf   :  { %v907_v46 = vperm.slane %v897_v41, 0 }
  0x12   :  { %80 = vperm.xlu2 %636, %v766_v7  }
  0x13   :  { %75 = vperm.xlu1 %635, %v771_v8   ;;  %70 = vperm.xlu0 %634, %v776_v9  }
  0x1a   :  { %95 = vperm.xlu2 %636, %v784_v10  }
  0x1b   :  { %90 = vperm.xlu1 %635, %v789_v11   ;;  %85 = vperm.xlu0 %634, %v794_v12  }
  0x22   :  { %110 = vperm.xlu2 %636, %v802_v13  }
  0x23   :  { %105 = vperm.xlu1 %635, %v807_v14   ;;  %100 = vperm.xlu0 %634, %v812_v15  }
  0x2a   :  { %158 = vperm.xlu2 %636, %v136_v16  }
  0x2b   :  { %153 = vperm.xlu1 %635, %v135_v17   ;;  %115 = vperm.xlu0 %634, %v826_v18  }
  0x32   :  { %173 = vperm.xlu2 %636, %v139_v19  }
  0x33   :  { %168 = vperm.xlu1 %635, %v138_v20   ;;  %163 = vperm.xlu0 %634, %v137_v21  }
  0x3a   :  { %188 = vperm.xlu2 %636, %v142_v22  }
  0x3b   :  { %183 = vperm.xlu1 %635, %v141_v23   ;;  %178 = vperm.xlu0 %634, %v140_v24  }
  0x42   :  { %203 = vperm.xlu2 %636, %v145_v25  }
  0x43   :  { %198 = vperm.xlu1 %635, %v144_v26   ;;  %193 = vperm.xlu0 %634, %v143_v27   ;;  %v954_v26 = vperm.slane %v897_v41, 1 }
  0x4a   :  { %218 = vperm.xlu2 %636, %v148_v28  }
  0x4b   :  { %213 = vperm.xlu1 %635, %v147_v29   ;;  %208 = vperm.xlu0 %634, %v146_v30  }
  0x52   :  { %637 = vset.pattern.permute.xlu2 %v690_v33 }
  0x53   :  { %228 = vperm.xlu1 %635, %v150_v31   ;;  %223 = vperm.xlu0 %634, %v149_v32  }
  0x54   :  { %248 = vperm.xlu2 %637, %v737_v2  }
  0x5b   :  { %639 = vset.pattern.permute.xlu1 %v690_v33  ;;  %638 = vset.pattern.permute.xlu0 %v690_v33 }
  0x5c   :  { %256 = vperm.xlu1 %639, %v732_v1   ;;  %260 = vperm.xlu2 %637, %v753_v5   ;;  %v61_v34 = vpop.permute.xlu2 %60 }
  0x5d   :  { %252 = vperm.xlu0 %638, %v758_v6   ;;  %v123_v52 = vmul.f32 %v907_v46, %v61_v34 }
  0x64   :  { %264 = vperm.xlu1 %639, %v727_v0   ;;  %268 = vperm.xlu2 %637, %v748_v4   ;;  %v880_v35 = vpop.permute.xlu2 %65 }
  0x65   :  { %272 = vperm.xlu0 %638, %v776_v9   ;;  %v124_v27 = vmul.f32 %v907_v46, %v880_v35 }
  0x6c   :  { %276 = vperm.xlu1 %639, %v771_v8   ;;  %308 = vperm.xlu2 %637, %v826_v18   ;;  %v885_v36 = vpop.permute.xlu2 %80 }
  0x6d   :  { %304 = vperm.xlu0 %638, %v802_v13   ;;  %v127_v35 = vmul.f32 %v907_v46, %v885_v36 }
  0x74   :  { %640 = vset.pattern.permute.xlu1 %v691_v37  ;;  %300 = vperm.xlu2 %637, %v807_v14   ;;  %v890_v38 = vpop.permute.xlu2 %95 }
  0x75   :  { %292 = vperm.xlu0 %638, %v784_v10   ;;  %405 = vperm.xlu1 %640, %v826_v18   ;;  %v51_v39 = vpop.permute.xlu1 %50  ;;  %v41_v40 = vpop.permute.xlu0 %40 }
  0x76   :  { %v119_v62 = vmul.f32 %v907_v46, %v41_v40 }
  0x7c   :  { %296 = vperm.xlu2 %637, %v812_v15   ;;  %v900_v42 = vpop.permute.xlu2 %110 }
  0x7d   :  { %644 = vset.pattern.permute.xlu0 %v691_v37  ;;  %641 = vset.pattern.permute.xlu1 %v692_v43  ;;  %v56_v44 = vpop.permute.xlu1 %55  ;;  %v46_v45 = vpop.permute.xlu0 %45 }
  0x7e   :  { %401 = vperm.xlu0 %644, %v802_v13   ;;  %502 = vperm.xlu1 %641, %v826_v18   ;;  %v120_v47 = vmul.f32 %v907_v46, %v46_v45  ;;  %v122_v19 = vmul.f32 %v907_v46, %v56_v44 }
  0x84   :  { %643 = vset.pattern.permute.xlu2 %v692_v43  ;;  %v159_v48 = vpop.permute.xlu2 %158 }
  0x85   :  { %v911_v49 = vadd.f32 %v159_v48, %v120_v47  ;;  %v76_v50 = vpop.permute.xlu1 %75  ;;  %498 = vperm.xlu2 %643, %v802_v13   ;;  %v71_v51 = vpop.permute.xlu0 %70 }
  0x86   :  { %381 = vperm.xlu0 %644, %v794_v12   ;;  %642 = vset.pattern.permute.xlu1 %v691_v37  ;;  %v126_v57 = vmul.f32 %v907_v46, %v76_v50  ;;  %v125_v25 = vmul.f32 %v907_v46, %v71_v51 }
  0x87   :  { %397 = vperm.xlu1 %642, %v807_v14  }
  0x8c   :  { %v174_v53 = vpop.permute.xlu2 %173 }
  0x8d   :  { %v918_v54 = vadd.f32 %v174_v53, %v123_v52  ;;  %v91_v55 = vpop.permute.xlu1 %90  ;;  %494 = vperm.xlu2 %643, %v807_v14   ;;  %v86_v56 = vpop.permute.xlu0 %85 }
  0x8e   :  { %361 = vperm.xlu0 %644, %v727_v0   ;;  %v129_v63 = vmul.f32 %v907_v46, %v91_v55  ;;  %v128_v34 = vmul.f32 %v907_v46, %v86_v56 }
  0x8f   :  { %393 = vperm.xlu1 %642, %v812_v15  }
  0x94   :  { %v189_v58 = vpop.permute.xlu2 %188 }
  0x95   :  { %v924_v59 = vadd.f32 %v189_v58, %v126_v57  ;;  %v926_v60 = vpop.permute.xlu1 %105  ;;  %646 = vset.pattern.permute.xlu2 %v691_v37  ;;  %v101_v61 = vpop.permute.xlu0 %100 }
  0x96   :  { %652 = vset.pattern.permute.xlu0 %v692_v43  ;;  %389 = vperm.xlu2 %646, %v784_v10   ;;  %v131_v36 = vmul.f32 %v907_v46, %v101_v61 }
  0x97   :  { %490 = vperm.xlu0 %652, %v812_v15   ;;  %645 = vset.pattern.permute.xlu1 %v690_v33  ;;  %v121_v15 = vmul.f32 %v907_v46, %v51_v39 }
  0x98   :  { %288 = vperm.xlu1 %645, %v789_v11  }
  0x9c   :  { %v204_v13 = vpop.permute.xlu2 %203 }
  0x9d   :  { %v936_v14 = vadd.f32 %v204_v13, %v129_v63  ;;  %v154_v16 = vpop.permute.xlu1 %153  ;;  %v938_v17 = vpop.permute.xlu0 %115 }
  0x9e   :  { %v231_v18 = vadd.f32 %v154_v16, %v119_v62  ;;  %385 = vperm.xlu2 %646, %v789_v11  }
  0x9f   :  { %474 = vperm.xlu0 %652, %v766_v7  }
  0xa0   :  { %284 = vperm.xlu1 %645, %v794_v12  }
  0xa4   :  { %v945_v20 = vpop.permute.xlu2 %218 }
  0xa5   :  { %v169_v21 = vpop.permute.xlu1 %168  ;;  %v164_v22 = vpop.permute.xlu0 %163 }
  0xa6   :  { %v234_v23 = vadd.f32 %v169_v21, %v122_v19  ;;  %v233_v24 = vadd.f32 %v164_v22, %v121_v15  ;;  %648 = vset.pattern.permute.xlu2 %v690_v33 }
  0xa7   :  { %280 = vperm.xlu2 %648, %v766_v7   ;;  %454 = vperm.xlu0 %652, %v753_v5  }
  0xa8   :  { %647 = vset.pattern.permute.xlu1 %v692_v43 }
  0xa9   :  { %486 = vperm.xlu1 %647, %v784_v10  }
  0xad   :  { %v184_v28 = vpop.permute.xlu1 %183  ;;  %v179_v29 = vpop.permute.xlu0 %178 }
  0xae   :  { %v237_v30 = vadd.f32 %v184_v28, %v125_v25  ;;  %v236_v31 = vadd.f32 %v179_v29, %v124_v27  ;;  %v249_v32 = vpop.permute.xlu2 %248 }
  0xaf   :  { %v312_v33 = vmul.f32 %v954_v26, %v249_v32  ;;  %649 = vset.pattern.permute.xlu2 %v691_v37  ;;  %442 = vperm.xlu0 %652, %v737_v2  }
  0xb0   :  { %377 = vperm.xlu2 %649, %v766_v7  }
  0xb1   :  { %v962_v10 = vadd.f32 %v312_v33, %v231_v18  ;;  %482 = vperm.xlu1 %647, %v789_v11   ;;  %v130_v11 = vmul.f32 %v907_v46, %v890_v38 }
  0xb5   :  { %v199_v39 = vpop.permute.xlu1 %198  ;;  %v194_v40 = vpop.permute.xlu0 %193 }
  0xb6   :  { %v968_v44 = vadd.f32 %v199_v39, %v128_v34  ;;  %v970_v45 = vadd.f32 %v194_v40, %v127_v35  ;;  %v261_v47 = vpop.permute.xlu2 %260 }
  0xb7   :  { %v315_v48 = vmul.f32 %v954_v26, %v261_v47  ;;  %658 = vset.pattern.permute.xlu0 %v689_v3 }
  0xb8   :  { %373 = vperm.xlu2 %649, %v771_v8  }
  0xb9   :  { %v975_v7 = vadd.f32 %v315_v48, %v234_v23  ;;  %478 = vperm.xlu1 %647, %v794_v12  }
  0xbd   :  { %v214_v50 = vpop.permute.xlu1 %213  ;;  %v209_v51 = vpop.permute.xlu0 %208 }
  0xbe   :  { %v981_v52 = vadd.f32 %v214_v50, %v131_v36  ;;  %v983_v53 = vadd.f32 %v209_v51, %v130_v11  ;;  %v269_v55 = vpop.permute.xlu2 %268  ;;  %v132_v50 = vmul.f32 %v907_v46, %v926_v60 }
  0xbf   :  { %v317_v56 = vmul.f32 %v954_v26, %v269_v55 }
  0xc0   :  { %651 = vset.pattern.permute.xlu2 %v692_v43 }
  0xc1   :  { %v987_v57 = vadd.f32 %v317_v56, %v236_v31  ;;  %650 = vset.pattern.permute.xlu1 %v691_v37  ;;  %470 = vperm.xlu2 %651, %v771_v8   ;;  %v244_v56 = vadd.f32 %v945_v20, %v132_v50 }
  0xc2   :  { %369 = vperm.xlu1 %650, %v776_v9  }
  0xc5   :  { %v229_v12 = vpop.permute.xlu1 %228  ;;  %v224_v38 = vpop.permute.xlu0 %223 }
  0xc6   :  { %v309_v58 = vpop.permute.xlu2 %308 }
  0xc9   :  { %466 = vperm.xlu2 %651, %v776_v9  }
  0xca   :  { %365 = vperm.xlu1 %650, %v748_v4  }
  0xce   :  { %v257_v61 = vpop.permute.xlu1 %256  ;;  %v301_v62 = vpop.permute.xlu2 %300 }
  0xcf   :  { %v314_v63 = vmul.f32 %v954_v26, %v257_v61  ;;  %v253_v13 = vpop.permute.xlu0 %252  ;;  %v325_v51 = vmul.f32 %v954_v26, %v301_v62 }
  0xd0   :  { %v313_v16 = vmul.f32 %v954_v26, %v253_v13 }
  0xd1   :  { %v996_v18 = vadd.f32 %v314_v63, %v233_v24  ;;  %654 = vset.pattern.permute.xlu2 %v691_v37 }
  0xd2   :  { %v1000_v8 = vadd.f32 %v313_v16, %v911_v49  ;;  %653 = vset.pattern.permute.xlu1 %v692_v43  ;;  %357 = vperm.xlu2 %654, %v753_v5  }
  0xd3   :  { %462 = vperm.xlu1 %653, %v748_v4  }
  0xd6   :  { %v265_v9 = vpop.permute.xlu1 %264  ;;  %v1006_v19 = vpop.permute.xlu2 %296 }
  0xd7   :  { %v316_v15 = vmul.f32 %v954_v26, %v265_v9  ;;  %v273_v21 = vpop.permute.xlu0 %272  ;;  %v324_v20 = vmul.f32 %v954_v26, %v1006_v19 }
  0xd8   :  { %v318_v22 = vmul.f32 %v954_v26, %v273_v21 }
  0xd9   :  { %v332_v23 = vadd.f32 %v316_v15, %v918_v54 }
  0xda   :  { %v1010_v24 = vadd.f32 %v318_v22, %v237_v30  ;;  %353 = vperm.xlu2 %654, %v732_v1   ;;  %v1025_v30 = vperm.slane %v897_v41, 2 }
  0xdb   :  { %458 = vperm.xlu1 %653, %v727_v0   ;;  %v134_v0 = vmul.f32 %v907_v46, %v938_v17 }
  0xdd   :  { %v246_v31 = vadd.f32 %v229_v12, %v134_v0 }
  0xde   :  { %v277_v49 = vpop.permute.xlu1 %276 }
  0xdf   :  { %v319_v5 = vmul.f32 %v954_v26, %v277_v49  ;;  %v305_v4 = vpop.permute.xlu0 %304  ;;  %v499_v25 = vpop.permute.xlu2 %498  ;;  %v340_v49 = vadd.f32 %v324_v20, %v981_v52 }
  0xe1   :  { %v1016_v27 = vadd.f32 %v319_v5, %v924_v59  ;;  %v327_v59 = vmul.f32 %v954_v26, %v309_v58  ;;  %v341_v58 = vadd.f32 %v325_v51, %v244_v56 }
  0xe2   :  { %656 = vset.pattern.permute.xlu2 %v692_v43  ;;  %v326_v43 = vmul.f32 %v954_v26, %v305_v4 }
  0xe3   :  { %655 = vset.pattern.permute.xlu1 %v691_v37  ;;  %450 = vperm.xlu2 %656, %v732_v1   ;;  %v1030_v37 = vperm.slane %v897_v41, 3  ;;  %v133_v1 = vmul.f32 %v907_v46, %v900_v42  ;;  %v343_v33 = vadd.f32 %v327_v59, %v246_v31 }
  0xe4   :  { %349 = vperm.xlu1 %655, %v758_v6  }
  0xe5   :  { %v245_v32 = vadd.f32 %v224_v38, %v133_v1  ;;  %v520_v34 = vmul.f32 %v1030_v37, %v499_v25 }
  0xe7   :  { %v293_v54 = vpop.permute.xlu0 %292  ;;  %v406_v28 = vpop.permute.xlu1 %405  ;;  %v342_v40 = vadd.f32 %v326_v43, %v245_v32 }
  0xe8   :  { %v495_v29 = vpop.permute.xlu2 %494  ;;  %v424_v17 = vmul.f32 %v1025_v30, %v406_v28 }
  0xeb   :  { %446 = vperm.xlu2 %656, %v758_v6  }
  0xec   :  { %345 = vperm.xlu1 %655, %v737_v2   ;;  %v440_v2 = vadd.f32 %v424_v17, %v343_v33 }
  0xf0   :  { %v402_v35 = vpop.permute.xlu0 %401  ;;  %v503_v39 = vpop.permute.xlu1 %502 }
  0xf1   :  { %v423_v6 = vmul.f32 %v1025_v30, %v402_v35  ;;  %v521_v41 = vmul.f32 %v1030_v37, %v503_v39  ;;  %v390_v47 = vpop.permute.xlu2 %389 }
  0xf2   :  { %v420_v1 = vmul.f32 %v1025_v30, %v390_v47 }
  0xf3   :  { %v439_v48 = vadd.f32 %v423_v6, %v342_v40  ;;  %v537_v11 = vadd.f32 %v521_v41, %v440_v2 }
  0xf4   :  { %657 = vset.pattern.permute.xlu1 %v689_v3  ;;  %v519_v3 = vmul.f32 %v1030_v37, %v495_v29 }
  0xf5   :  { %v553_v42 = vmax.f32 %v537_v11, 0.0  ;;  %v536_v36 = vadd.f32 %v520_v34, %v439_v48 }
  0xf7   :  { %561 = vmatpush.msra.mxu0 %v553_v42  ;;  %v552_v55 = vmax.f32 %v536_v36, 0.0 }
  0xf8   :  { %v382_v12 = vpop.permute.xlu0 %381 }
  0xf9   :  { %v398_v38 = vpop.permute.xlu1 %397  ;;  %562 = vmatpush.msra.mxu0 %v552_v55  ;;  %v386_v63 = vpop.permute.xlu2 %385  ;;  %v418_v42 = vmul.f32 %v1025_v30, %v382_v12 }
  0xfa   :  { %v422_v61 = vmul.f32 %v1025_v30, %v398_v38  ;;  %v419_v40 = vmul.f32 %v1025_v30, %v386_v63 }
  0xfc   :  { %v438_v13 = vadd.f32 %v422_v61, %v341_v58 }
  0xfe   :  { %v535_v16 = vadd.f32 %v519_v3, %v438_v13 }
 0x100   :  { %v362_v9 = vpop.permute.xlu0 %361  ;;  %v551_v15 = vmax.f32 %v535_v16, 0.0 }
 0x101   :  { %v413_v46 = vmul.f32 %v1025_v30, %v362_v9  ;;  %v394_v60 = vpop.permute.xlu1 %393  ;;  %v281_v21 = vpop.permute.xlu2 %280 }
 0x102   :  { %563 = vmatpush.msra.mxu0 %v551_v15  ;;  %v421_v22 = vmul.f32 %v1025_v30, %v394_v60  ;;  %v320_v2 = vmul.f32 %v954_v26, %v281_v21 }
 0x103   :  { %v1048_v62 = vadd.f32 %v413_v46, %v332_v23  ;;  %v323_v23 = vmul.f32 %v954_v26, %v293_v54 }
 0x104   :  { %v437_v4 = vadd.f32 %v421_v22, %v340_v49  ;;  %v336_v51 = vadd.f32 %v320_v2, %v970_v45 }
 0x105   :  { %v339_v43 = vadd.f32 %v323_v23, %v983_v53  ;;  %v555_v23 = vld [vmem:[%s1107_s4] sm:$0xff] }
 0x106   :  { %558 = vperm.xlu1 %657, %v555_v23  }
 0x107   :  { %v436_v32 = vadd.f32 %v420_v1, %v339_v43 }
 0x109   :  { %v491_v5 = vpop.permute.xlu0 %490 }
 0x10a   :  { %v518_v25 = vmul.f32 %v1030_v37, %v491_v5  ;;  %v289_v28 = vpop.permute.xlu1 %288  ;;  %v378_v31 = vpop.permute.xlu2 %377 }
 0x10b   :  { %v322_v52 = vmul.f32 %v954_v26, %v289_v28  ;;  %v417_v36 = vmul.f32 %v1025_v30, %v378_v31 }
 0x10c   :  { %v534_v29 = vadd.f32 %v518_v25, %v437_v4 }
 0x10d   :  { %v338_v35 = vadd.f32 %v322_v52, %v936_v14  ;;  %v433_v58 = vadd.f32 %v417_v36, %v336_v51 }
 0x10e   :  { %v550_v0 = vmax.f32 %v534_v29, 0.0 }
 0x10f   :  { %v435_v53 = vadd.f32 %v419_v40, %v338_v35 }
 0x110   :  { %564 = vmatpush.msra.mxu0 %v550_v0 }
 0x111   :  { %v475_v11 = vpop.permute.xlu0 %474 }
 0x112   :  { %v285_v59 = vpop.permute.xlu1 %284  ;;  %v374_v19 = vpop.permute.xlu2 %373  ;;  %v514_v55 = vmul.f32 %v1030_v37, %v475_v11 }
 0x113   :  { %v321_v41 = vmul.f32 %v954_v26, %v285_v59  ;;  %v416_v56 = vmul.f32 %v1025_v30, %v374_v19 }
 0x115   :  { %v337_v14 = vadd.f32 %v321_v41, %v968_v44  ;;  %v432_v3 = vadd.f32 %v416_v56, %v1016_v27  ;;  %v530_v44 = vadd.f32 %v514_v55, %v433_v58  ;;  %v554_v56 = vld [vmem:[%s1106_s3] sm:$0xff]  ;;  %s693_s3 = smov [#allocation2]  }
 0x116   :  { %s618_s9 = sshll.u32 %s693_s3, 4  ;;  %s619_s9 = int_to_ptr.vmem [resolvable:$true] %s618_s9 }
 0x117   :  { %v434_v63 = vadd.f32 %v418_v42, %v337_v14  ;;  %v546_v45 = vmax.f32 %v530_v44, 0.0 }
 0x11b   :  { %v487_v17 = vpop.permute.xlu1 %486  ;;  %v471_v6 = vpop.permute.xlu2 %470 }
 0x11c   :  { %v517_v33 = vmul.f32 %v1030_v37, %v487_v17  ;;  %v513_v26 = vmul.f32 %v1030_v37, %v471_v6 }
 0x11e   :  { %v533_v34 = vadd.f32 %v517_v33, %v436_v32  ;;  %v529_v9 = vadd.f32 %v513_v26, %v432_v3  ;;  %v604_v3 = vlaneseq }
 0x120   :  { %v549_v39 = vmax.f32 %v533_v34, 0.0  ;;  %v545_v46 = vmax.f32 %v529_v9, 0.0 }
 0x122   :  { %565 = vmatpush.msra.mxu0 %v549_v39 }
 0x123   :  { %v483_v54 = vpop.permute.xlu1 %482  ;;  %v467_v12 = vpop.permute.xlu2 %466 }
 0x124   :  { %v516_v47 = vmul.f32 %v1030_v37, %v483_v54  ;;  %v512_v20 = vmul.f32 %v1030_v37, %v467_v12 }
 0x126   :  { %v532_v48 = vadd.f32 %v516_v47, %v435_v53 }
 0x128   :  { %v548_v50 = vmax.f32 %v532_v48, 0.0 }
 0x12a   :  { %566 = vmatpush.msra.mxu0 %v548_v50 }
 0x12b   :  { %v479_v38 = vpop.permute.xlu1 %478 }
 0x12c   :  { %v515_v61 = vmul.f32 %v1030_v37, %v479_v38  ;;  %v358_v21 = vpop.permute.xlu2 %357 }
 0x12d   :  { %v412_v31 = vmul.f32 %v1025_v30, %v358_v21 }
 0x12e   :  { %v531_v13 = vadd.f32 %v515_v61, %v434_v63 }
 0x12f   :  { %v428_v43 = vadd.f32 %v412_v31, %v975_v7 }
 0x130   :  { %v547_v16 = vmax.f32 %v531_v13, 0.0 }
 0x132   :  { %567 = vmatpush.msra.mxu0 %v547_v16 }
 0x134   :  { %v370_v15 = vpop.permute.xlu1 %369  ;;  %568 = vmatpush.msra.mxu0 %v546_v45  ;;  %v354_v4 = vpop.permute.xlu2 %353  ;;  %v605_v45 = vshrl.u32 %v604_v3, 7 }
 0x135   :  { %v415_v60 = vmul.f32 %v1025_v30, %v370_v15  ;;  %v411_v32 = vmul.f32 %v1025_v30, %v354_v4 }
 0x136   :  { %569 = vmatpush.msra.mxu0 %v545_v46  ;;  %vm607_vm4 = vcmp.eq.s32.totalorder %v605_v45, 1  ;;  %vm606_vm5 = vcmp.eq.s32.totalorder %v605_v45, 0 }
 0x137   :  { %v431_v22 = vadd.f32 %v415_v60, %v1010_v24  ;;  %v455_v24 = vpop.permute.xlu0 %454  ;;  %v427_v34 = vadd.f32 %v411_v32, %v996_v18 }
 0x138   :  { %v509_v17 = vmul.f32 %v1030_v37, %v455_v24 }
 0x139   :  { %v528_v49 = vadd.f32 %v512_v20, %v431_v22 }
 0x13a   :  { %v525_v39 = vadd.f32 %v509_v17, %v428_v43 }
 0x13b   :  { %v544_v5 = vmax.f32 %v528_v49, 0.0 }
 0x13c   :  { %v366_v27 = vpop.permute.xlu1 %365  ;;  %v541_v54 = vmax.f32 %v525_v39, 0.0 }
 0x13d   :  { %570 = vmatpush.msra.mxu0 %v544_v5  ;;  %v414_v25 = vmul.f32 %v1025_v30, %v366_v27  ;;  %v451_v19 = vpop.permute.xlu2 %450 }
 0x13e   :  { %v508_v52 = vmul.f32 %v1030_v37, %v451_v19 }
 0x13f   :  { %v430_v29 = vadd.f32 %v414_v25, %v987_v57  ;;  %v443_v42 = vpop.permute.xlu0 %442 }
 0x140   :  { %v524_v6 = vadd.f32 %v508_v52, %v427_v34  ;;  %v506_v14 = vmul.f32 %v1030_v37, %v443_v42 }
 0x142   :  { %v540_v47 = vmax.f32 %v524_v6, 0.0 }
 0x145   :  { %v463_v28 = vpop.permute.xlu1 %462  ;;  %v447_v41 = vpop.permute.xlu2 %446 }
 0x146   :  { %v511_v0 = vmul.f32 %v1030_v37, %v463_v28  ;;  %v507_v48 = vmul.f32 %v1030_v37, %v447_v41 }
 0x148   :  { %v527_v59 = vadd.f32 %v511_v0, %v430_v29 }
 0x14a   :  { %v543_v1 = vmax.f32 %v527_v59, 0.0 }
 0x14c   :  { %571 = vmatpush.msra.mxu0 %v543_v1 }
 0x14d   :  { %v459_v57 = vpop.permute.xlu1 %458 }
 0x14e   :  { %v510_v33 = vmul.f32 %v1030_v37, %v459_v57 }
 0x150   :  { %v526_v35 = vadd.f32 %v510_v33, %v1048_v62 }
 0x152   :  { %v542_v40 = vmax.f32 %v526_v35, 0.0 }
 0x154   :  { %572 = vmatpush.msra.mxu0 %v542_v40 }
 0x156   :  { %v350_v7 = vpop.permute.xlu1 %349  ;;  %573 = vmatpush.msra.mxu0 %v541_v54 }
 0x157   :  { %v410_v53 = vmul.f32 %v1025_v30, %v350_v7 }
 0x158   :  { %574 = vmatpush.msra.mxu0 %v540_v47 }
 0x159   :  { %v426_v2 = vadd.f32 %v410_v53, %v1000_v8 }
 0x15b   :  { %v523_v11 = vadd.f32 %v507_v48, %v426_v2 }
 0x15d   :  { %v539_v18 = vmax.f32 %v523_v11, 0.0 }
 0x15e   :  { %v346_v62 = vpop.permute.xlu1 %345 }
 0x15f   :  { %v409_v36 = vmul.f32 %v1025_v30, %v346_v62  ;;  %575 = vmatpush.msra.mxu0 %v539_v18 }
 0x161   :  { %v425_v50 = vadd.f32 %v409_v36, %v962_v10 }
 0x163   :  { %v522_v51 = vadd.f32 %v506_v14, %v425_v50 }
 0x165   :  { %v538_v55 = vmax.f32 %v522_v51, 0.0 }
 0x167   :  { %576 = vmatpush.msra.mxu0 %v538_v55 }
 0x168   :  { %577 = vmatmul.f32.vlgmr.msra.gmra.mxu0 %v554_v56 }
 0x178   :  { %v559_v8 = vpop.permute.xlu1 %558 }
 0x1e5   :  { %v578_v38 = vpop.f32.mrf.mxu0 }
 0x1e6   :  { %v579_v58 = vadd.f32 %v578_v38, %v559_v8 }
 0x1e8   :  { %v582_v26 = vrot.slane %v579_v58, 1 }
 0x1ea   :  { %v584_v61 = vsub.f32 %v579_v58, %v582_v26 }
 0x1ec   :  { %v585_v63 = vmul.f32 1.442695, %v584_v61 }
 0x1ee   :  { %659 = vpow2.f32 %v585_v63 }
 0x1f4   :  { %v660_v30 = vpop.eup %659 }
 0x1f5   :  { %v587_v12 = vadd.f32 1.0, %v660_v30 }
 0x1f7   :  { %661 = vrcp.f32 %v587_v12  ;;  %v599_v44 = vand.u32 2147483648, %v587_v12  ;;  %v597_v9 = vand.u32 2147483647, %v587_v12  ;;  %vm593_vm1 = vweird.f32 %v587_v12 }
 0x1f9   :  { %v600_v46 = vor.u32 1.1754944e-38, %v599_v44  ;;  %vm598_vm3 = vcmp.eq.f32.partialorder %v597_v9, 8.507059e+37 }
 0x1fd   :  { %v662_v37 = vpop.eup %661 }
 0x1fe   :  { %v589_v10 = vmul.f32 %v662_v37, %v587_v12  ;;  %vm594_vm0 = vweird.f32 %v662_v37 }
 0x1ff   :  { %vm595_vm2 = vmor %vm593_vm1, %vm594_vm0 }
 0x200   :  { %v590_v13 = vsub.f32 1.0, %v589_v10 }
 0x202   :  { %v591_v16 = vmul.f32 %v662_v37, %v590_v13 }
 0x204   :  { %v592_v15 = vadd.f32 %v662_v37, %v591_v16 }
 0x206   :  { %v596_v60 = vsel %vm595_vm2, %v662_v37, %v592_v15 }
 0x207   :  { %v601_v20 = vsel %vm598_vm3, %v600_v46, %v596_v60 }
 0x208   :  { %v608_v21 = vperm.slane %v601_v20, 0  ;;  %v603_v22 = vsub.f32 1.0, %v601_v20 }
 0x20a   :  { %v609_v49 = vsel %vm607_vm4, %v608_v21, %v579_v58  ;;  %v610_v5 = vperm.slane %v603_v22, 0 }
 0x20c   :  { %v611_v27 = vsel %vm606_vm5, %v610_v5, %v609_v49 }
 0x20d   :  { %612 = vst [vmem:[#allocation2] sm:$0xff] %v611_v27 }
 0x20e   :  { %623 = dma.vmem_to_hbm [thread:$0]  %s619_s9, 128, %s621_s11, [#allocation3]  }
 0x20f   :  { %687 = dma.done.wait [#allocation3], 128  }
 0x210   :  { %688 = vsyncadd [#allocation3], 4294967168 }
 0x211   :  { %628 = vsyncpa [#allocation3], 1 }

</bundles_post_ra>
